<compile_context>
chip_gen: v5e
topology: v5e:2x2
jax: 0.10.0
libtpu: 0.0.40
codegen_flags: <defaults>
</compile_context>

<pallas_src>
import jax
import jax.numpy as jnp
from jax.experimental import pallas as pl
from jax.experimental.pallas import tpu as pltpu


# Conservative VMEM planning: stay well under v7x's 64 MiB physical VMEM
# (32 MiB default scoped limit); v5e/v6e have 128 MiB so this is always safe.
_VMEM_BUDGET = 40 * 1024 * 1024   # target for tiles + matmul result
_VMEM_LIMIT = 48 * 1024 * 1024    # scoped limit handed to the compiler


def _round_up(x, m):
    return (x + m - 1) // m * m


def _cnn_kernel(x_ref, w_ref, b_ref, o_ref):
    """One batch tile: fused conv (all taps, all time steps) -> time max -> bias -> ReLU.

    x_ref: (block_n, m_word*e_char)     bf16, channels-last flattened:
           column t*e_char + c == input[n, c, t]
    w_ref: (m_word*e_char, L*e_word_p)  bf16, Toeplitz-expanded weight:
           w_ref[(t+j)*e_char + c, t*e_word_p + o] = W[o, c, j]; 0 elsewhere
    b_ref: (1, e_word_p)                f32
    o_ref: (block_n, e_word_p)          lane-dense (e_word_p % 128 == 0)
    """
    e_word_p = o_ref.shape[1]
    L = w_ref.shape[1] // e_word_p

    # Single MXU matmul covers every tap and every time step; contraction depth
    # is the full (128-lane aligned) m_word*e_char axis, accumulation in f32.
    y = jnp.dot(x_ref[...], w_ref[...], preferred_element_type=jnp.float32)

    # Running max over time. Each slice is a 128-lane-aligned column block of
    # the matmul result (no relayout); only the (block_n, e_word_p) accumulator
    # stays live, so the unrolled loop doesn't blow up vreg live ranges even
    # for realistic L (~17).
    m = y[:, :e_word_p]
    for t in range(1, L):
        m = jnp.maximum(m, y[:, t * e_word_p:(t + 1) * e_word_p])

    # Bias + ReLU AFTER the pool:  max_t relu(conv_t + b) == relu(max_t conv_t + b)
    # (bias time-invariant, ReLU monotone).  Epilogue math in f32 (v5e has no
    # bf16 VPU); cast only at the lane-dense store.
    o_ref[...] = jnp.maximum(m + b_ref[...], 0.0).astype(o_ref.dtype)


def _pick_block_n(N, lane_in, w_cols, e_word_p, requested, out_bytes):
    """Batch tile size: multiple of 16 (bf16 (16,128) sublane packing), split
    large N into >=2 grid blocks (v7x megacore), and fit the VMEM budget."""
    bn = max(16, min(_round_up(requested, 16), _round_up(N, 16)))
    if N >= 32:
        # Ensure the "parallel" grid axis has >= 2 blocks so v7x's 2 TensorCores
        # both get work (no effect on correctness or 1-TC v5e/v6e).
        bn = min(bn, max(16, _round_up(-(-N // 2), 16)))

    def vmem_bytes(b):
        return (2 * b * lane_in * 2             # x tile, bf16, double-buffered
                + 2 * lane_in * w_cols * 2      # Toeplitz weight, bf16 (worst case 2 bufs)
                + 2 * b * e_word_p * out_bytes  # output tile, double-buffered
                + b * w_cols * 4)               # f32 matmul result (compiler VMEM)

    while bn > 16 and vmem_bytes(bn) > _VMEM_BUDGET:
        bn = max(16, _round_up(bn // 2, 16))
    return bn


def cnn_forward(x, weight, bias, *, block_n=1024, input_layout="NCW",
                out_dtype=jnp.bfloat16):
    """
    Char-CNN forward: Conv1d(e_char -> e_word, K, valid) -> ReLU -> max over time.

    Args:
      x:      (N, e_char, m_word) if input_layout == "NCW" (PyTorch layout), or
              (N, m_word, e_char) if input_layout == "NWC" (channels-last; preferred
              upstream layout -- skips the transpose pass over the largest tensor).
      weight: (e_word, e_char, K)  -- PyTorch Conv1d weight layout.
      bias:   (e_word,)
      out_dtype: dtype of the returned embeddings (bf16 halves output HBM traffic).
    Returns:
      (N, e_word) in out_dtype.
    """
    if input_layout == "NCW":
        N, e_char, m_word = x.shape
        # TODO(synk): store activations channels-last (NWC) + bf16 upstream so this
        # transpose over the largest tensor disappears; allow_input_fusion below
        # lets XLA fold the remaining fused copy into the pallas_call input DMA.
        x_flat = jnp.transpose(x, (0, 2, 1)).reshape(N, m_word * e_char)
    elif input_layout == "NWC":
        N, m_word, e_char = x.shape
        x_flat = x.reshape(N, m_word * e_char)
    else:
        raise ValueError(f"unknown input_layout: {input_layout!r}")
    x_flat = x_flat.astype(jnp.bfloat16)   # one fused pass; no batch zero-pad pass

    e_word, e_char_w, K = weight.shape
    assert e_char_w == e_char, "weight/in-channel mismatch"
    L = m_word - K + 1
    assert L >= 1, "m_word must be >= kernel_size (PyTorch Conv1d errors too)"

    e_word_p = _round_up(e_word, 128)        # lane-dense output stores
    lane_in = m_word * e_char
    w_cols = L * e_word_p

    # ---- weight/bias prep (tiny, one-time, plain JAX) ----
    # PyTorch (e_word, e_char, K) -> tap-major (K*e_char, e_word): row j*e_char + c.
    w_tap = jnp.transpose(weight, (2, 1, 0)).reshape(K * e_char, e_word)
    # Toeplitz expansion: column block t holds the taps shifted to rows
    # [t*e_char, (t+K)*e_char); out-channels zero-padded to e_word_p lanes.
    w_toe = jnp.zeros((lane_in, L, e_word_p), dtype=weight.dtype)
    for t in range(L):
        w_toe = w_toe.at[t * e_char:(t + K) * e_char, t, :e_word].set(w_tap)
    w_toe = w_toe.reshape(lane_in, w_cols).astype(jnp.bfloat16)
    b_p = jnp.pad(bias.astype(jnp.float32), (0, e_word_p - e_word)).reshape(1, e_word_p)

    out_bytes = jnp.dtype(out_dtype).itemsize
    block_n = _pick_block_n(N, lane_in, w_cols, e_word_p, block_n, out_bytes)
    grid = (pl.cdiv(N, block_n),)   # ragged last block handled by Pallas (rows independent)

    cost = pl.CostEstimate(
        flops=2 * N * lane_in * w_cols,
        transcendentals=0,
        bytes_accessed=(N * lane_in * 2 + lane_in * w_cols * 2
                        + e_word_p * 4 + N * e_word_p * out_bytes))

    out = pl.pallas_call(
        _cnn_kernel,
        out_shape=jax.ShapeDtypeStruct((N, e_word_p), out_dtype),
        grid_spec=pltpu.PrefetchScalarGridSpec(
            num_scalar_prefetch=0,
            grid=grid,
            in_specs=[
                pl.BlockSpec((block_n, lane_in), lambda i: (i, 0)),
                pl.BlockSpec((lane_in, w_cols), lambda i: (0, 0)),
                pl.BlockSpec((1, e_word_p), lambda i: (0, 0)),
            ],
            out_specs=pl.BlockSpec((block_n, e_word_p), lambda i: (i, 0)),
        ),
        compiler_params=pltpu.CompilerParams(
            dimension_semantics=("parallel",),
            # Let XLA fold the transpose/cast producing x_flat into the input DMA
            # (it may decline; either way results are identical).
            allow_input_fusion=[True, False, False],
            vmem_limit_bytes=_VMEM_LIMIT,
        ),
        cost_estimate=cost,
    )(x_flat, w_toe, b_p)

    # TODO(synk): if the consumer (e.g. the Highway layer) can accept the
    # lane-padded (N, e_word_p) result directly (pad its weights instead), drop
    # this slice to remove one more pass over the output.
    return out[:, :e_word]


def cnn_reference(x_ncw, weight, bias):
    """Pure-JAX f32 reference matching PyTorch semantics (for validation)."""
    N, e_char, m_word = x_ncw.shape
    e_word, _, K = weight.shape
    L = m_word - K + 1
    # conv_out[n, l, o] = sum_{c,j} x[n, c, l+j] * W[o, c, j] + b[o]
    windows = jnp.stack([x_ncw[:, :, t:t + K] for t in range(L)], axis=1)  # (N, L, e_char, K)
    conv = jnp.einsum('nlck,ock->nlo', windows, weight) + bias[None, None, :]
    act = jnp.maximum(conv, 0.0)
    return jnp.max(act, axis=1)  # (N, e_word)


if __name__ == "__main__":
    # Small, deterministic shapes: src_len=8, b=2  => N = 16 "words"
    e_char = 16     # input channel count (character embedding size)
    e_word = 32     # output channel count (word embedding size)
    m_word = 8      # max word length
    K = 5           # kernel size
    N = 16          # src_len * b

    key = jax.random.PRNGKey(0)
    kx, kw, kb = jax.random.split(key, 3)
    x = jax.random.normal(kx, (N, e_char, m_word), dtype=jnp.float32)
    weight = jax.random.normal(kw, (e_word, e_char, K), dtype=jnp.float32) * 0.1
    bias = jax.random.normal(kb, (e_word,), dtype=jnp.float32) * 0.1

    out = jax.jit(cnn_forward)(x, weight, bias)
    out = jax.block_until_ready(out)

    ref = cnn_reference(x, weight, bias)
    assert out.shape == (N, e_word)
    out_f32 = out.astype(jnp.float32)
    max_err = jnp.max(jnp.abs(out_f32 - ref))
    # Tolerance covers bf16 operands + bf16 output quantization (f32 accumulation).
    assert jnp.allclose(out_f32, ref, atol=3e-2, rtol=3e-2), (
        f"mismatch vs reference, max abs err = {max_err}")

    print("KERNEL_OK")
</pallas_src>

<mosaic_0001>
module attributes {stable_mosaic.version = 11 : i64} {
  func.func @_cnn_kernel(%arg0: i32, %arg1: memref<16x128xbf16, #tpu.memory_space<vmem>>, %arg2: memref<128x512xbf16, #tpu.memory_space<vmem>>, %arg3: memref<1x128xf32, #tpu.memory_space<vmem>>, %arg4: memref<16x128xbf16, #tpu.memory_space<vmem>>) attributes {dimension_semantics = [#tpu.dimension_semantics<parallel>], iteration_bounds = array<i64: 1>, scalar_prefetch = 0 : i64, scratch_operands = 0 : i64, tpu.core_type = #tpu.core_type<tc>, window_params = [{transform_indices = @transform_0, window_bounds = array<i64: 16, 128>}, {pipeline_mode = #tpu.pipeline_mode<synchronous>, transform_indices = @transform_1, window_bounds = array<i64: 128, 512>}, {pipeline_mode = #tpu.pipeline_mode<synchronous>, transform_indices = @transform_2, window_bounds = array<i64: 1, 128>}, {transform_indices = @transform_3, window_bounds = array<i64: 16, 128>}]} {
    %c0 = arith.constant 0 : index
    %c0_0 = arith.constant 0 : index
    %0 = vector.load %arg1[%c0, %c0_0] : memref<16x128xbf16, #tpu.memory_space<vmem>>, vector<16x128xbf16>
    %c0_1 = arith.constant 0 : index
    %c0_2 = arith.constant 0 : index
    %1 = vector.load %arg2[%c0_1, %c0_2] : memref<128x512xbf16, #tpu.memory_space<vmem>>, vector<128x512xbf16>
    %cst = arith.constant dense<0.000000e+00> : vector<16x512xf32>
    %2 = tpu.matmul %0, %1, %cst {dimension_numbers = #tpu.dot_dimension_numbers<[1], [0], [0], [1], [0, 0, 1, 1], [], []>} : vector<16x128xbf16>, vector<128x512xbf16>, vector<16x512xf32> -> vector<16x512xf32>
    %3 = vector.extract_strided_slice %2 {offsets = [0, 0], sizes = [16, 128], strides = [1, 1]} : vector<16x512xf32> to vector<16x128xf32>
    %4 = vector.extract_strided_slice %2 {offsets = [0, 128], sizes = [16, 128], strides = [1, 1]} : vector<16x512xf32> to vector<16x128xf32>
    %5 = arith.maximumf %3, %4 : vector<16x128xf32>
    %6 = vector.extract_strided_slice %2 {offsets = [0, 256], sizes = [16, 128], strides = [1, 1]} : vector<16x512xf32> to vector<16x128xf32>
    %7 = arith.maximumf %5, %6 : vector<16x128xf32>
    %8 = vector.extract_strided_slice %2 {offsets = [0, 384], sizes = [16, 128], strides = [1, 1]} : vector<16x512xf32> to vector<16x128xf32>
    %9 = arith.maximumf %7, %8 : vector<16x128xf32>
    %c0_3 = arith.constant 0 : index
    %c0_4 = arith.constant 0 : index
    %10 = vector.load %arg3[%c0_3, %c0_4] : memref<1x128xf32, #tpu.memory_space<vmem>>, vector<1x128xf32>
    %11 = vector.broadcast %10 : vector<1x128xf32> to vector<16x128xf32>
    %12 = arith.addf %9, %11 : vector<16x128xf32>
    %cst_5 = arith.constant 0.000000e+00 : f32
    %13 = vector.broadcast %cst_5 : f32 to vector<16x128xf32>
    %14 = arith.maximumf %12, %13 : vector<16x128xf32>
    %15 = arith.truncf %14 : vector<16x128xf32> to vector<16x128xbf16>
    %c0_6 = arith.constant 0 : index
    %c0_7 = arith.constant 0 : index
    %16 = vector.load %arg4[%c0_6, %c0_7] : memref<16x128xbf16, #tpu.memory_space<vmem>>, vector<16x128xbf16>
    tpu.vector_store %arg4[%c0_6, %c0_7], %15 {strides = array<i32>} : memref<16x128xbf16, #tpu.memory_space<vmem>>, vector<16x128xbf16>,
    return
  }
  func.func @transform_0(%arg0: i32) -> (i32, i32) {
    %c0_i32 = arith.constant 0 : i32
    %c0_i32_0 = arith.constant 0 : i32
    return %arg0, %c0_i32 : i32, i32
  }
  func.func @transform_1(%arg0: i32) -> (i32, i32) {
    %c0_i32 = arith.constant 0 : i32
    %c0_i32_0 = arith.constant 0 : i32
    %c0_i32_1 = arith.constant 0 : i32
    return %c0_i32, %c0_i32_0 : i32, i32
  }
  func.func @transform_2(%arg0: i32) -> (i32, i32) {
    %c0_i32 = arith.constant 0 : i32
    %c0_i32_0 = arith.constant 0 : i32
    %c0_i32_1 = arith.constant 0 : i32
    return %c0_i32, %c0_i32_0 : i32, i32
  }
  func.func @transform_3(%arg0: i32) -> (i32, i32) {
    %c0_i32 = arith.constant 0 : i32
    %c0_i32_0 = arith.constant 0 : i32
    return %arg0, %c0_i32 : i32, i32
  }
}

</mosaic_0001>

<bundles_post_ra>
// kernel: cnn_forward.1
= control target key start
LH: loop header
LB: loop body
LE: loop exit
PB: predicated region body
PF: predicated region fallthrough
CT: control target
= control target key end

     0   :  { %s731_s0 = inlined_call_operand.vmem [shape: bf16[16,128], index: 0, kind: input, shape index: {}]   ;;  %s732_s1 = inlined_call_operand.vmem [shape: bf16[128,512], index: 1, kind: input, shape index: {}]   ;;  %s733_s2 = inlined_call_operand.vmem [shape: f32[1,128], index: 2, kind: input, shape index: {}]   ;;  %s734_s3 = inlined_call_operand.hbm [shape: bf16[16,128], index: 3, kind: output, shape index: {}]  }
   0x1   :  { %v425_v0 = vld [vmem:[%s732_s1 + $0xe0] sm:$0xf]  ;;  %v470_v1 = vld [vmem:[%s732_s1 + $0xec] sm:$0xf0]  ;;  %v468_v2 = vld [vmem:[%s732_s1 + $0xe4] sm:$0xf] }
   0x2   :  { %v426_v3 = vor.u32 %v470_v1, %v425_v0  ;;  %v427_v4 = vld [vmem:[%s732_s1 + $0xf0] sm:$0xf0]  ;;  %v433_v5 = vld [vmem:[%s732_s1 + $0xe8] sm:$0xf]  ;;  %v471_v6 = vld [vmem:[%s732_s1 + $0xf4] sm:$0xf0] }
   0x3   :  { %v430_v7 = vor.u32 %v468_v2, %v427_v4  ;;  %v434_v8 = vor.u32 %v471_v6, %v433_v5  ;;  %v469_v9 = vld [vmem:[%s732_s1 + $0xec] sm:$0xf]  ;;  %v435_v10 = vld [vmem:[%s732_s1 + $0xf8] sm:$0xf0]  ;;  %v409_v11 = vld [vmem:[%s732_s1 + $0xc0] sm:$0xf] }
   0x4   :  { %215 = vmatpush.bf16.msra.mxu0 %v426_v3  ;;  %v438_v12 = vor.u32 %v469_v9, %v435_v10  ;;  %v466_v13 = vld [vmem:[%s732_s1 + $0xcc] sm:$0xf0]  ;;  %v464_v14 = vld [vmem:[%s732_s1 + $0xc4] sm:$0xf]  ;;  %v411_v15 = vld [vmem:[%s732_s1 + $0xd0] sm:$0xf0] }
   0x5   :  { %229 = vmatpush.bf16.msra.mxu1 %v430_v7  ;;  %243 = vmatpush.bf16.msra.mxu2 %v434_v8  ;;  %v410_v16 = vor.u32 %v466_v13, %v409_v11  ;;  %v414_v17 = vor.u32 %v464_v14, %v411_v15  ;;  %v417_v18 = vld [vmem:[%s732_s1 + $0xc8] sm:$0xf]  ;;  %v467_v19 = vld [vmem:[%s732_s1 + $0xd4] sm:$0xf0]  ;;  %v465_v20 = vld [vmem:[%s732_s1 + $0xcc] sm:$0xf] }
   0x6   :  { %257 = vmatpush.bf16.msra.mxu3 %v438_v12  ;;  %v418_v21 = vor.u32 %v467_v19, %v417_v18  ;;  %v419_v22 = vld [vmem:[%s732_s1 + $0xd8] sm:$0xf0]  ;;  %v393_v23 = vld [vmem:[%s732_s1 + $0xa0] sm:$0xf]  ;;  %v462_v24 = vld [vmem:[%s732_s1 + $0xac] sm:$0xf0] }
   0x7   :  { %v422_v25 = vor.u32 %v465_v20, %v419_v22  ;;  %v460_v26 = vld [vmem:[%s732_s1 + $0xa4] sm:$0xf]  ;;  %v395_v27 = vld [vmem:[%s732_s1 + $0xb0] sm:$0xf0]  ;;  %v401_v28 = vld [vmem:[%s732_s1 + $0xa8] sm:$0xf]  ;;  %v394_v29 = vor.u32 %v462_v24, %v393_v23 }
   0x8   :  { %216 = vmatpush.bf16.msra.mxu0 %v410_v16  ;;  %v463_v30 = vld [vmem:[%s732_s1 + $0xb4] sm:$0xf0]  ;;  %v461_v31 = vld [vmem:[%s732_s1 + $0xac] sm:$0xf]  ;;  %v403_v32 = vld [vmem:[%s732_s1 + $0xb8] sm:$0xf0]  ;;  %v398_v33 = vor.u32 %v460_v26, %v395_v27 }
   0x9   :  { %230 = vmatpush.bf16.msra.mxu1 %v414_v17  ;;  %244 = vmatpush.bf16.msra.mxu2 %v418_v21  ;;  %v402_v34 = vor.u32 %v463_v30, %v401_v28  ;;  %v377_v35 = vld [vmem:[%s732_s1 + $0x80] sm:$0xf]  ;;  %v458_v36 = vld [vmem:[%s732_s1 + $0x8c] sm:$0xf0]  ;;  %v456_v37 = vld [vmem:[%s732_s1 + $0x84] sm:$0xf]  ;;  %v406_v38 = vor.u32 %v461_v31, %v403_v32 }
   0xa   :  { %258 = vmatpush.bf16.msra.mxu3 %v422_v25  ;;  %v379_v39 = vld [vmem:[%s732_s1 + $0x90] sm:$0xf0]  ;;  %v385_v40 = vld [vmem:[%s732_s1 + $0x88] sm:$0xf]  ;;  %v459_v41 = vld [vmem:[%s732_s1 + $0x94] sm:$0xf0]  ;;  %v378_v44 = vor.u32 %v458_v36, %v377_v35 }
   0xb   :  { %v457_v42 = vld [vmem:[%s732_s1 + $0x8c] sm:$0xf]  ;;  %v387_v43 = vld [vmem:[%s732_s1 + $0x98] sm:$0xf0]  ;;  %v382_v45 = vor.u32 %v456_v37, %v379_v39  ;;  %v386_v46 = vor.u32 %v459_v41, %v385_v40  ;;  %v361_v47 = vld [vmem:[%s732_s1 + $0x60] sm:$0xf] }
   0xc   :  { %217 = vmatpush.bf16.msra.mxu0 %v394_v29  ;;  %v454_v48 = vld [vmem:[%s732_s1 + $0x6c] sm:$0xf0]  ;;  %v452_v49 = vld [vmem:[%s732_s1 + $0x64] sm:$0xf]  ;;  %v390_v50 = vor.u32 %v457_v42, %v387_v43  ;;  %v363_v51 = vld [vmem:[%s732_s1 + $0x70] sm:$0xf0] }
   0xd   :  { %231 = vmatpush.bf16.msra.mxu1 %v398_v33  ;;  %245 = vmatpush.bf16.msra.mxu2 %v402_v34  ;;  %v369_v52 = vld [vmem:[%s732_s1 + $0x68] sm:$0xf]  ;;  %v455_v53 = vld [vmem:[%s732_s1 + $0x74] sm:$0xf0]  ;;  %v453_v54 = vld [vmem:[%s732_s1 + $0x6c] sm:$0xf]  ;;  %v362_v56 = vor.u32 %v454_v48, %v361_v47  ;;  %v366_v57 = vor.u32 %v452_v49, %v363_v51 }
   0xe   :  { %259 = vmatpush.bf16.msra.mxu3 %v406_v38  ;;  %v371_v55 = vld [vmem:[%s732_s1 + $0x78] sm:$0xf0]  ;;  %v370_v58 = vor.u32 %v455_v53, %v369_v52  ;;  %v345_v59 = vld [vmem:[%s732_s1 + $0x40] sm:$0xf]  ;;  %v450_v60 = vld [vmem:[%s732_s1 + $0x4c] sm:$0xf0] }
   0xf   :  { %v448_v61 = vld [vmem:[%s732_s1 + $0x44] sm:$0xf]  ;;  %v374_v62 = vor.u32 %v453_v54, %v371_v55  ;;  %v347_v63 = vld [vmem:[%s732_s1 + $0x50] sm:$0xf0]  ;;  %v353_v0 = vld [vmem:[%s732_s1 + $0x48] sm:$0xf]  ;;  %v346_v4 = vor.u32 %v450_v60, %v345_v59 }
  0x10   :  { %218 = vmatpush.bf16.msra.mxu0 %v378_v44  ;;  %v451_v1 = vld [vmem:[%s732_s1 + $0x54] sm:$0xf0]  ;;  %v449_v2 = vld [vmem:[%s732_s1 + $0x4c] sm:$0xf]  ;;  %v355_v3 = vld [vmem:[%s732_s1 + $0x58] sm:$0xf0]  ;;  %v350_v6 = vor.u32 %v448_v61, %v347_v63 }
  0x11   :  { %232 = vmatpush.bf16.msra.mxu1 %v382_v45  ;;  %246 = vmatpush.bf16.msra.mxu2 %v386_v46  ;;  %v329_v5 = vld [vmem:[%s732_s1 + $0x20] sm:$0xf]  ;;  %v354_v7 = vor.u32 %v451_v1, %v353_v0  ;;  %v446_v8 = vld [vmem:[%s732_s1 + $0x2c] sm:$0xf0]  ;;  %v444_v9 = vld [vmem:[%s732_s1 + $0x24] sm:$0xf]  ;;  %v358_v11 = vor.u32 %v449_v2, %v355_v3 }
  0x12   :  { %260 = vmatpush.bf16.msra.mxu3 %v390_v50  ;;  %v331_v10 = vld [vmem:[%s732_s1 + $0x30] sm:$0xf0]  ;;  %v337_v12 = vld [vmem:[%s732_s1 + $0x28] sm:$0xf]  ;;  %v447_v13 = vld [vmem:[%s732_s1 + $0x34] sm:$0xf0] }
  0x13   :  { %v445_v14 = vld [vmem:[%s732_s1 + $0x2c] sm:$0xf]  ;;  %v339_v15 = vld [vmem:[%s732_s1 + $0x38] sm:$0xf0] }
  0x14   :  { %219 = vmatpush.bf16.msra.mxu0 %v362_v56 }
  0x15   :  { %233 = vmatpush.bf16.msra.mxu1 %v366_v57  ;;  %247 = vmatpush.bf16.msra.mxu2 %v370_v58 }
  0x16   :  { %261 = vmatpush.bf16.msra.mxu3 %v374_v62 }
  0x17   :  { %8 = vsyncpa [#allocation3], 0  ;;  %v330_v16 = vor.u32 %v446_v8, %v329_v5  ;;  %v334_v17 = vor.u32 %v444_v9, %v331_v10  ;;  %v338_v18 = vor.u32 %v447_v13, %v337_v12  ;;  %v313_v19 = vld [vmem:[%s732_s1] sm:$0xf]  ;;  %v442_v20 = vld [vmem:[%s732_s1 + $0xc] sm:$0xf0]  ;;  %v342_v22 = vor.u32 %v445_v14, %v339_v15 }
  0x18   :  { %220 = vmatpush.bf16.msra.mxu0 %v346_v4  ;;  %v440_v21 = vld [vmem:[%s732_s1 + $0x4] sm:$0xf]  ;;  %v315_v23 = vld [vmem:[%s732_s1 + $0x10] sm:$0xf0]  ;;  %v321_v24 = vld [vmem:[%s732_s1 + $0x8] sm:$0xf]  ;;  %v314_v28 = vor.u32 %v442_v20, %v313_v19 }
  0x19   :  { %234 = vmatpush.bf16.msra.mxu1 %v350_v6  ;;  %248 = vmatpush.bf16.msra.mxu2 %v354_v7  ;;  %v443_v25 = vld [vmem:[%s732_s1 + $0x14] sm:$0xf0]  ;;  %v441_v26 = vld [vmem:[%s732_s1 + $0xc] sm:$0xf]  ;;  %v323_v27 = vld [vmem:[%s732_s1 + $0x18] sm:$0xf0]  ;;  %v318_v29 = vor.u32 %v440_v21, %v315_v23 }
  0x1a   :  { %262 = vmatpush.bf16.msra.mxu3 %v358_v11  ;;  %v322_v30 = vor.u32 %v443_v25, %v321_v24  ;;  %v326_v31 = vor.u32 %v441_v26, %v323_v27  ;;  %v439_v32 = vld [vmem:[%s731_s0] sm:$0xff]  ;;  %s507_s0 = smov [#allocation2]   ;;  %s295_s11 = sshll.u32 %s734_s3, 4  ;;  %s296_s11 = int_to_ptr.hbm [resolvable:$true] %s295_s11 }
  0x1b   :  { %v480_v42 = vld [vmem:[%s733_s2] ss:$0 sm:$0xff]  ;;  %s293_s8 = sshll.u32 %s507_s0, 4  ;;  %s508_s2 = smov 64   ;;  %s294_s8 = int_to_ptr.vmem [resolvable:$true] %s293_s8 }
  0x1c   :  { %221 = vmatpush.bf16.msra.mxu0 %v330_v16  ;;  %s509_s12 = smov 4  }
  0x1d   :  { %235 = vmatpush.bf16.msra.mxu1 %v334_v17  ;;  %249 = vmatpush.bf16.msra.mxu2 %v338_v18 }
  0x1e   :  { %263 = vmatpush.bf16.msra.mxu3 %v342_v22 }
  0x20   :  { %222 = vmatpush.bf16.msra.mxu0 %v314_v28 }
  0x21   :  { %236 = vmatpush.bf16.msra.mxu1 %v318_v29  ;;  %250 = vmatpush.bf16.msra.mxu2 %v322_v30 }
  0x22   :  { %264 = vmatpush.bf16.msra.mxu3 %v326_v31 }
  0x23   :  { %223 = vmatmul.bf16.vlgmr.msra.gmra.mxu0 %v439_v32 }
  0x24   :  { %237 = vmatmul.bf16.vlgmr.msra.gmra.mxu1 %v439_v32  ;;  %251 = vmatmul.bf16.vlgmr.msra.gmra.mxu2 %v439_v32 }
  0x25   :  { %265 = vmatmul.bf16.vlgmr.msra.gmra.mxu3 %v439_v32 }
  0xa0   :  { %v224_v33 = vpop.f32.mrf.mxu0 }
  0xa1   :  { %v238_v34 = vpop.f32.mrf.mxu1 }
  0xa2   :  { %v271_v35 = vmax.f32 %v224_v33, %v238_v34 }
  0xa7   :  { %v252_v36 = vpop.f32.mrf.mxu2 }
  0xa8   :  { %v266_v37 = vpop.f32.mrf.mxu3  ;;  %v273_v38 = vmax.f32 %v271_v35, %v252_v36  ;;  %v226_v39 = vpop.f32.mrf.mxu0 }
  0xa9   :  { %v240_v40 = vpop.f32.mrf.mxu1 }
  0xaa   :  { %v275_v41 = vmax.f32 %v273_v38, %v266_v37  ;;  %v272_v43 = vmax.f32 %v226_v39, %v240_v40 }
  0xac   :  { %v281_v47 = vadd.f32 %v480_v42, %v275_v41 }
  0xae   :  { %v283_v50 = vmax.f32 %v281_v47, 0.0 }
  0xaf   :  { %v254_v44 = vpop.f32.mrf.mxu2 }
  0xb0   :  { %v274_v45 = vmax.f32 %v272_v43, %v254_v44  ;;  %v268_v46 = vpop.f32.mrf.mxu3 }
  0xb2   :  { %v276_v48 = vmax.f32 %v274_v45, %v268_v46 }
  0xb4   :  { %v282_v49 = vadd.f32 %v480_v42, %v276_v48 }
  0xb6   :  { %v284_v51 = vmax.f32 %v282_v49, 0.0 }
  0xb8   :  { %v475_v52 = vpack.c.bf16 %v284_v51, %v283_v50 }
  0xba   :  { %476 = vst [vmem:[#allocation2] sm:$0xff] %v475_v52  }
  0xbb   :  { %301 = dma.vmem_to_hbm [thread:$0]  %s294_s8, 128, %s296_s11, [#allocation3], %s508_s2, %s508_s2, %s509_s12  }
  0xbc   :  { %505 = dma.done.wait [#allocation3], 128  }
  0xbd   :  { %506 = vsyncadd [#allocation3], 4294967168 }
  0xbe   :  { %306 = vsyncpa [#allocation3], 1 }

</bundles_post_ra>
